<compile_context>
chip_gen: v7x
topology: tpu7x:2x2x1
jax: 0.10.0
libtpu: 0.0.40
codegen_flags: <defaults>
</compile_context>

<pallas_src>
import functools

import jax
import jax.numpy as jnp
import numpy as np
from jax.experimental import pallas as pl
from jax.experimental.pallas import tpu as pltpu


def _cconv2d_kernel(x_ref, w_ref, b_ref, o_ref, *, kh, kw, sh, sw, th, w_out):
    """One (batch, row-tile) per grid step.

    x_ref : [1, Cin, Hp, Wp]    full padded image (resident across row tiles)
    w_ref : [Cout, KH*KW*Cin]   taps + input channels flattened, (i, j, c) order
    b_ref : [Cout, 1]           fused bias
    o_ref : [1, Cout, TH*w_out] lane-dense output slab
    """
    cin = x_ref.shape[1]
    t = pl.program_id(1)
    th_in = (th - 1) * sh + kh                        # input rows this tile needs
    h0 = pl.multiple_of(t * (th * sh), th * sh)       # first input row of tile
    # Pull only the rows needed by this row tile into vregs (not the full image).
    xt = x_ref[0, :, pl.ds(h0, th_in), :]             # [Cin, th_in, Wp]

    # im2col over the already-loaded tile: one [K, TH*w_out] patch matrix.
    cols = []
    for i in range(kh):
        for j in range(kw):
            # TODO(synk): stride>1 uses a strided slice per tap; a polyphase
            # pre-split would give unit-stride loads if stride>1 is ever used.
            patch = jax.lax.slice(
                xt,
                (0, i, j),
                (cin, i + (th - 1) * sh + 1, j + (w_out - 1) * sw + 1),
                (1, sh, sw),
            )                                         # [Cin, TH, w_out]
            cols.append(patch.reshape(cin, th * w_out))
    pmat = jnp.concatenate(cols, axis=0)              # [KH*KW*Cin, TH*w_out]

    # Single contraction over taps + channels; bias folded into the epilogue.
    acc = jnp.dot(w_ref[...], pmat, preferred_element_type=jnp.float32)
    acc = acc + b_ref[...].astype(jnp.float32)        # [Cout,1] broadcast
    o_ref[0] = acc.astype(o_ref.dtype)


def _pick_row_tile(h_out, w_out):
    """Row tile TH: divides h_out; prefer TH*w_out a multiple of 128 (lane-dense)."""
    fallback = None
    for d in range(1, h_out + 1):
        if h_out % d:
            continue
        lanes = d * w_out
        if lanes % 128 == 0:
            if 512 <= lanes <= 4096:        # comfortably amortized, VMEM-friendly
                return d
            if fallback is None:
                fallback = d                # smallest lane-dense tile
    return fallback if fallback is not None else h_out


def conv2d_pallas(x_nchw, w2d, bias, *, kernel_size, stride):
    """Fused (block-structured) conv. `x_nchw` is already padded."""
    B, Cin, Hp, Wp = x_nchw.shape
    KH, KW = kernel_size
    sh, sw = stride
    Cout = w2d.shape[0]
    h_out = (Hp - KH) // sh + 1
    w_out = (Wp - KW) // sw + 1
    th = _pick_row_tile(h_out, w_out)
    nt = h_out // th

    kernel = functools.partial(
        _cconv2d_kernel, kh=KH, kw=KW, sh=sh, sw=sw, th=th, w_out=w_out)

    y = pl.pallas_call(
        kernel,
        out_shape=jax.ShapeDtypeStruct((B, Cout, h_out * w_out), x_nchw.dtype),
        grid_spec=pltpu.PrefetchScalarGridSpec(
            num_scalar_prefetch=0,
            grid=(B, nt),
            in_specs=[
                # Full padded image per batch; block index ignores t, so it is
                # fetched once per batch and stays resident across row tiles.
                # TODO(synk): for very large images, switch to a halo-tiled
                # (pl.Element) input fetch to bound input VMEM on v7x (64 MiB).
                pl.BlockSpec((1, Cin, Hp, Wp), lambda b, t: (b, 0, 0, 0)),
                pl.BlockSpec((Cout, KH * KW * Cin), lambda b, t: (0, 0)),
                pl.BlockSpec((Cout, 1), lambda b, t: (0, 0)),
            ],
            out_specs=pl.BlockSpec((1, Cout, th * w_out), lambda b, t: (b, 0, t)),
        ),
        compiler_params=pltpu.CompilerParams(
            dimension_semantics=("parallel", "parallel")),
    )(x_nchw, w2d, bias)
    # Free reshape (minor-dim split) back to NCHW -- no extra HBM pass.
    return y.reshape(B, Cout, h_out, w_out)


def cconv2d_forward(x_nchw, wr, wi, br, bi, *, kernel_size, stride, padding,
                    causal, dilation=1, groups=1):
    """Replicates cConv2d.forward (complex_axis=1)."""
    assert dilation == 1 and groups == 1, "dilation>1 / groups>1 not supported"
    oc, ic = wr.shape[0], wr.shape[1]
    KH, KW = kernel_size

    # Single fused pad (one HBM pass): width padding from F.pad in forward(),
    # height padding from nn.Conv2d(padding=[padding[0], 0]).
    if padding[1] != 0 and causal:
        wpad = (padding[1], 0)
    else:
        # Faithful to the PyTorch F.pad([p1, p0, 0, 0]) quirk:
        # left width pad = padding[1], right width pad = padding[0].
        wpad = (padding[1], padding[0])
    xp = jnp.pad(x_nchw, ((0, 0), (0, 0), (padding[0], padding[0]), wpad))

    # Fuse the complex conv into one conv with block weights (OIHW order):
    #   real = conv(xr, Wr) - conv(xi, Wi) + (br - bi)
    #   imag = conv(xr, Wi) + conv(xi, Wr) + (br + bi)
    w_full = jnp.concatenate(
        [jnp.concatenate([wr, -wi], axis=1),
         jnp.concatenate([wi, wr], axis=1)], axis=0)        # [2oc, 2ic, KH, KW]
    # Flatten taps + input channels in (i, j, c) order -> [Cout, KH*KW*Cin].
    w2d = jnp.transpose(w_full, (0, 2, 3, 1)).reshape(2 * oc, KH * KW * 2 * ic)
    b2d = jnp.concatenate([br - bi, br + bi]).reshape(2 * oc, 1)

    return conv2d_pallas(xp, w2d, b2d, kernel_size=kernel_size, stride=stride)


def cconv2d_reference(x, wr, wi, br, bi, *, kernel_size, stride, padding, causal):
    """Pure-JAX reference matching the PyTorch forward exactly (complex_axis=1)."""
    if padding[1] != 0 and causal:
        x = jnp.pad(x, ((0, 0), (0, 0), (0, 0), (padding[1], 0)))
    else:
        x = jnp.pad(x, ((0, 0), (0, 0), (0, 0), (padding[1], padding[0])))

    def conv(z, w, b):
        y = jax.lax.conv_general_dilated(
            z, w, window_strides=stride,
            padding=[(padding[0], padding[0]), (0, 0)],
            dimension_numbers=("NCHW", "OIHW", "NCHW"),
        )
        return y + b[None, :, None, None]

    ic = x.shape[1] // 2
    xr, xi = x[:, :ic], x[:, ic:]
    r2r = conv(xr, wr, br)   # real_conv(real)
    i2i = conv(xi, wi, bi)   # imag_conv(imag)
    r2i = conv(xr, wi, bi)   # imag_conv(real)
    i2r = conv(xi, wr, br)   # real_conv(imag)
    return jnp.concatenate([r2r - i2i, r2i + i2r], axis=1)


if __name__ == "__main__":
    # Module config (complex_axis=1, causal=True, dilation=1, groups=1)
    in_channels, out_channels = 4, 8
    kernel_size = (3, 2)
    stride = (1, 1)
    padding = (1, 1)
    causal = True
    ic, oc = in_channels // 2, out_channels // 2

    key = jax.random.PRNGKey(0)
    kx, kr, ki, kbr, kbi = jax.random.split(key, 5)

    # Input: NCHW, channels = real(ic) ++ imag(ic)
    B, H, W = 2, 16, 16
    x = jax.random.normal(kx, (B, in_channels, H, W), dtype=jnp.float32)

    # Parameters: nn.init.normal_(std=0.05); nonzero biases to exercise fusion.
    wr = 0.05 * jax.random.normal(kr, (oc, ic, *kernel_size), dtype=jnp.float32)
    wi = 0.05 * jax.random.normal(ki, (oc, ic, *kernel_size), dtype=jnp.float32)
    br = 0.05 * jax.random.normal(kbr, (oc,), dtype=jnp.float32)
    bi = 0.05 * jax.random.normal(kbi, (oc,), dtype=jnp.float32)

    out = cconv2d_forward(
        x, wr, wi, br, bi,
        kernel_size=kernel_size, stride=stride, padding=padding, causal=causal,
    )
    out = jax.block_until_ready(out)

    ref = cconv2d_reference(
        x, wr, wi, br, bi,
        kernel_size=kernel_size, stride=stride, padding=padding, causal=causal,
    )
    ref = jax.block_until_ready(ref)

    assert out.shape == ref.shape, (out.shape, ref.shape)
    np.testing.assert_allclose(np.asarray(out), np.asarray(ref), rtol=1e-4, atol=1e-4)
    print("KERNEL_OK")
</pallas_src>

<mosaic_0001>
module attributes {stable_mosaic.version = 11 : i64} {
  func.func @_cconv2d_kernel(%arg0: i32, %arg1: i32, %arg2: memref<1x4x18x17xf32, #tpu.memory_space<vmem>>, %arg3: memref<8x24xf32, #tpu.memory_space<vmem>>, %arg4: memref<8x1xf32, #tpu.memory_space<vmem>>, %arg5: memref<1x8x128xf32, #tpu.memory_space<vmem>>) attributes {dimension_semantics = [#tpu.dimension_semantics<parallel>, #tpu.dimension_semantics<parallel>], iteration_bounds = array<i64: 2, 2>, scalar_prefetch = 0 : i64, scratch_operands = 0 : i64, tpu.core_type = #tpu.core_type<tc>, window_params = [{transform_indices = @transform_0, window_bounds = array<i64: 1, 4, 18, 17>}, {pipeline_mode = #tpu.pipeline_mode<synchronous>, transform_indices = @transform_1, window_bounds = array<i64: 8, 24>}, {pipeline_mode = #tpu.pipeline_mode<synchronous>, transform_indices = @transform_2, window_bounds = array<i64: 8, 1>}, {transform_indices = @transform_3, window_bounds = array<i64: 1, 8, 128>}]} {
    %c8_i32 = arith.constant 8 : i32
    %0 = arith.muli %arg1, %c8_i32 : i32
    %1 = tpu.assume_multiple %0, 8 : i32
    %c0 = arith.constant 0 : index
    %c0_0 = arith.constant 0 : index
    %2 = arith.index_cast %1 : i32 to index
    %c0_1 = arith.constant 0 : index
    %3 = vector.load %arg2[%c0, %c0_0, %2, %c0_1] : memref<1x4x18x17xf32, #tpu.memory_space<vmem>>, vector<1x4x10x17xf32>
    %4 = vector.shape_cast %3 : vector<1x4x10x17xf32> to vector<4x10x17xf32>
    %5 = vector.extract_strided_slice %4 {offsets = [0, 0, 0], sizes = [4, 8, 16], strides = [1, 1, 1]} : vector<4x10x17xf32> to vector<4x8x16xf32>
    %6 = vector.shape_cast %5 : vector<4x8x16xf32> to vector<4x128xf32>
    %7 = vector.extract_strided_slice %4 {offsets = [0, 0, 1], sizes = [4, 8, 16], strides = [1, 1, 1]} : vector<4x10x17xf32> to vector<4x8x16xf32>
    %8 = vector.shape_cast %7 : vector<4x8x16xf32> to vector<4x128xf32>
    %9 = vector.extract_strided_slice %4 {offsets = [0, 1, 0], sizes = [4, 8, 16], strides = [1, 1, 1]} : vector<4x10x17xf32> to vector<4x8x16xf32>
    %10 = vector.shape_cast %9 : vector<4x8x16xf32> to vector<4x128xf32>
    %11 = vector.extract_strided_slice %4 {offsets = [0, 1, 1], sizes = [4, 8, 16], strides = [1, 1, 1]} : vector<4x10x17xf32> to vector<4x8x16xf32>
    %12 = vector.shape_cast %11 : vector<4x8x16xf32> to vector<4x128xf32>
    %13 = vector.extract_strided_slice %4 {offsets = [0, 2, 0], sizes = [4, 8, 16], strides = [1, 1, 1]} : vector<4x10x17xf32> to vector<4x8x16xf32>
    %14 = vector.shape_cast %13 : vector<4x8x16xf32> to vector<4x128xf32>
    %15 = vector.extract_strided_slice %4 {offsets = [0, 2, 1], sizes = [4, 8, 16], strides = [1, 1, 1]} : vector<4x10x17xf32> to vector<4x8x16xf32>
    %16 = vector.shape_cast %15 : vector<4x8x16xf32> to vector<4x128xf32>
    %17 = tpu.concatenate %6, %8, %10, %12, %14, %16 in 0 : vector<4x128xf32>, vector<4x128xf32>, vector<4x128xf32>, vector<4x128xf32>, vector<4x128xf32>, vector<4x128xf32> -> vector<24x128xf32>
    %c0_2 = arith.constant 0 : index
    %c0_3 = arith.constant 0 : index
    %18 = vector.load %arg3[%c0_2, %c0_3] : memref<8x24xf32, #tpu.memory_space<vmem>>, vector<8x24xf32>
    %cst = arith.constant dense<0.000000e+00> : vector<8x128xf32>
    %19 = tpu.matmul %18, %17, %cst {dimension_numbers = #tpu.dot_dimension_numbers<[1], [0], [0], [1], [0, 0, 1, 1], [], []>} : vector<8x24xf32>, vector<24x128xf32>, vector<8x128xf32> -> vector<8x128xf32>
    %c0_4 = arith.constant 0 : index
    %c0_5 = arith.constant 0 : index
    %20 = vector.load %arg4[%c0_4, %c0_5] : memref<8x1xf32, #tpu.memory_space<vmem>>, vector<8x1xf32>
    %21 = vector.broadcast %20 : vector<8x1xf32> to vector<8x128xf32>
    %22 = arith.addf %19, %21 : vector<8x128xf32>
    %c0_6 = arith.constant 0 : index
    %c0_7 = arith.constant 0 : index
    %c0_8 = arith.constant 0 : index
    %23 = vector.load %arg5[%c0_6, %c0_7, %c0_8] : memref<1x8x128xf32, #tpu.memory_space<vmem>>, vector<1x8x128xf32>
    %24 = vector.shape_cast %23 : vector<1x8x128xf32> to vector<8x128xf32>
    %25 = vector.shape_cast %22 : vector<8x128xf32> to vector<1x8x128xf32>
    tpu.vector_store %arg5[%c0_6, %c0_7, %c0_8], %25 {strides = array<i32>} : memref<1x8x128xf32, #tpu.memory_space<vmem>>, vector<1x8x128xf32>,
    return
  }
  func.func @transform_0(%arg0: i32, %arg1: i32) -> (i32, i32, i32, i32) {
    %c0_i32 = arith.constant 0 : i32
    %c0_i32_0 = arith.constant 0 : i32
    %c0_i32_1 = arith.constant 0 : i32
    %c0_i32_2 = arith.constant 0 : i32
    return %arg0, %c0_i32, %c0_i32_0, %c0_i32_1 : i32, i32, i32, i32
  }
  func.func @transform_1(%arg0: i32, %arg1: i32) -> (i32, i32) {
    %c0_i32 = arith.constant 0 : i32
    %c0_i32_0 = arith.constant 0 : i32
    %c0_i32_1 = arith.constant 0 : i32
    return %c0_i32, %c0_i32_0 : i32, i32
  }
  func.func @transform_2(%arg0: i32, %arg1: i32) -> (i32, i32) {
    %c0_i32 = arith.constant 0 : i32
    %c0_i32_0 = arith.constant 0 : i32
    %c0_i32_1 = arith.constant 0 : i32
    return %c0_i32, %c0_i32_0 : i32, i32
  }
  func.func @transform_3(%arg0: i32, %arg1: i32) -> (i32, i32, i32) {
    %c0_i32 = arith.constant 0 : i32
    %c0_i32_0 = arith.constant 0 : i32
    return %arg0, %c0_i32, %arg1 : i32, i32, i32
  }
}

</mosaic_0001>

<bundles_post_ra>
// kernel: tpu_custom_call.1
= control target key start
LH: loop header
LB: loop body
LE: loop exit
PB: predicated region body
PF: predicated region fallthrough
CT: control target
= control target key end

     0   :  { %8 = vsyncpa [#allocation3], 0  ;;  %s1824_s0 = inlined_call_operand.vmem [shape: f32[2,4,18,17], index: 0, kind: input, shape index: {}]   ;;  %s1825_s1 = inlined_call_operand.vmem [shape: f32[8,24], index: 1, kind: input, shape index: {}]   ;;  %s1826_s2 = inlined_call_operand.vmem [shape: f32[8,1], index: 2, kind: input, shape index: {}]   ;;  %s1827_s3 = inlined_call_operand.hbm [shape: f32[2,8,256], index: 3, kind: output, shape index: {}]  }
   0x1   :  { %10 = vsyncpa [#allocation3 + $0x1], 0  ;;  %s1403_s12 = smov 0   ;;  %s1405_s13 = smov 0  }
   0x2   :  { %s1407_s14 = smov 0   ;;  %s1409_s15 = smov 0  }
   0x3   :  { %s1411_s16 = smov 0   ;;  %s1413_s17 = smov 0  }
   0x4   :  { %s1415_s18 = smov 0   ;;  %s1417_s19 = smov 0  }
   0x5 LB: > { %s1081_s20 = sadd.s32 4294967295, %s1366_s19   ;;  %s1082_s21 = sadd.s32 4294967294, %s1366_s19   ;;  %s1366_s19 = sphi %s1417_s19, %s16_s19   ;;  %s1362_s18 = sphi %s1415_s18, %s1836_s18   ;;  %s1358_s17 = sphi %s1413_s17, %s1835_s17   ;;  %s1354_s16 = sphi %s1411_s16, %s1834_s16   ;;  %s1350_s15 = sphi %s1409_s15, %s1833_s15   ;;  %s1346_s14 = sphi %s1407_s14, %s1832_s14   ;;  %s1342_s13 = sphi %s1405_s13, %s1831_s13   ;;  %s1338_s12 = sphi %s1403_s12, %s1830_s12  }
   0x6   : > { %s25_s22 = sadd.s32 1, %s1358_s17  ;;  %s28_s23 = sadd.s32 1, %s1362_s18 }
   0x7   : > { %p26_p0 = scmp.ge.s32.totalorder %s25_s22, 2  ;;  %p115_p1 = scmp.ne.s32.totalorder %s1346_s14, %s1342_s13 }
   0x8   : > { %p116_p2 = scmp.eq.s32.totalorder %s1081_s20, 3  ;;  %p121_p5 = scmp.ne.s32.totalorder %s1342_s13, %s1338_s12 }
   0x9   : > { %s1838_s22 = smov (%p26_p0, %s25_s22), 0  ;;  %s1840_s23 = smov (!%p26_p0, %s28_s23), %s1362_s18 }
   0xa   : > { %s101_s24 = ssub.s32 %s1358_s17, %s1838_s22  ;;  %p1454_p3 = por %p116_p2, %p115_p1 }
   0xb   : > { %p30_p4 = scmp.ge.s32.totalorder %s1840_s23, 2  ;;  %p122_p6 = scmp.eq.s32.totalorder %s1082_s21, 3 }
   0xc   : > { %p1085_p7 = scmp.ge.s32.totalorder %s1366_s19, 1  ;;  %p154_p9 = scmp.lt.s32.totalorder %s1366_s19, 5 }
   0xd   : > { %s1842_s23 = smov (%p30_p4, %s1840_s23), 0  ;;  %p1463_p8 = por %p122_p6, %p121_p5 }
   0xe   : > { %s100_s27 = ssub.s32 %s1362_s18, %s1842_s23  ;;  %s105_s28 = sadd.s32 1, %s1346_s14 }
   0xf   : > { %s102_s29 = sor.u32 %s101_s24, %s100_s27  ;;  %p155_p10 = pnand %p1085_p7, %p154_p9 }
  0x10   : > { %p103_p11 = scmp.eq.s32.totalorder %s102_s29, 0  ;;  %p178_p12 = scmp.lt.s32.totalorder (!%p155_p10), %s1354_s16, 1  ;;  %v1368_v0 = vmov (!%p155_p10), 1983009808   ;;  %v198_v2 = vlaneseq (!%p155_p10)  ;;  %v1369_v3 = vmov (!%p155_p10), 1934713408  }
  0x11   : > { %158 = sbr.rel (%p155_p10) target bundleno = 559 (0x22f), region = 32  ;;  %v196_v1 = vunpack.c.l.s4 (!%p155_p10), %v1368_v0  ;;  %s1088_s6 = sshll.u32 (!%p155_p10), %s1350_s15, 3  ;;  %v228_v4 = vunpack.c.l.s4 (!%p155_p10), %v1369_v3  ;;  %vm426_vm0 = vcmask (!%p155_p10), 1046528   ;;  %vm661_vm1 = vcmask (!%p155_p10), 1045504  }
  0x12   : > { %s1472_s30 = scalar_select %p103_p11, %s1346_s14, %s105_s28  }
  0x13   : > { %v197_v5 = vunpack.c.0.s8 (!%p155_p10), %v196_v1  ;;  %v199_v6 = vshrl.u32 (!%p155_p10), %v198_v2, 7  ;;  %v229_v10 = vunpack.c.0.s8 (!%p155_p10), %v228_v4  ;;  %s1370_s11 = smov (!%p155_p10), 127   ;;  %v1371_v1 = vmov (!%p155_p10), 0.0   ;;  %s1372_s20 = smov (!%p155_p10), 16  }
  0x14   : > { %s1373_s21 = smov (!%p155_p10), 96   ;;  %s1374_s24 = smov (!%p155_p10), 32   ;;  %vm1380_vm2 = vmmov (!%p155_p10), 0   ;;  %vm289_vm3 = vcmask (!%p155_p10), 130048   ;;  %vm291_vm4 = vcmask (!%p155_p10), 261120   ;;  %vm293_vm5 = vcmask (!%p155_p10), 392192  }
  0x15   : > { %v1496_v20 = vsub.s32 (!%p155_p10), %v197_v5, %v199_v6  ;;  %v1503_v29 = vsub.s32 (!%p155_p10), %v229_v10, %v199_v6  ;;  %s1375_s27 = smov (!%p155_p10), 112   ;;  %s1376_s28 = smov (!%p155_p10), 48   ;;  %1105 = vmatprep.mubr.msk.f32.mxu0 (!%p155_p10), %vm1380_vm2, %v1371_v1  ;;  %vm295_vm6 = vcmask (!%p155_p10), 523264   ;;  %vm297_vm7 = vcmask (!%p155_p10), 654336  }
  0x16   : > { %s1377_s29 = smov (!%p155_p10), 64   ;;  %vm299_vm8 = vcmask (!%p155_p10), 785408   ;;  %vm301_vm9 = vcmask (!%p155_p10), 916480   ;;  %vm905_vm10 = vcmask (!%p155_p10), 1043456   ;;  %vm916_vm11 = vcmask (!%p155_p10), 195584  }
  0x18   : > { %s179_s4 = scalar_select %p178_p12, %s1354_s16, 1 }
  0x1a   : > { %s1111_s5 = smul.u32 96, %s179_s4  ;;  %s1378_s4 = smov 80  }
  0x1c   : > { %s182_s9 = scalar_lea.vmem %s1824_s0, %s1111_s5  ;;  %s1382_s5 = smov [#allocation2]  }
  0x1d   : > { %s184_s10 = scalar_lea.vmem %s182_s9, %s1088_s6  ;;  %s175_s9 = sand.u32 1, %s1342_s13  }
  0x1e   : > { %v1480_v7 = vld [vmem:[%s184_s10 + $0x30] sm:$0xff]  ;;  %v1482_v8 = vld [vmem:[%s184_s10] sm:$0xff]  ;;  %v1484_v9 = vld [vmem:[%s184_s10 + $0x48] sm:$0xff]  ;;  %s1276_s6 = sshll.u32 %s1382_s5, 4  ;;  %s1277_s6 = int_to_ptr.vmem [resolvable:$false] %s1276_s6 }
  0x1f   : > { %311 = vrot.lane.b32.xlu1 %v1480_v7, %s1370_s11  ;;  %307 = vrot.lane.b32.xlu0 %v1482_v8, %s1370_s11  ;;  %v1490_v11 = vld [vmem:[%s184_s10 + $0x18] sm:$0xff]  ;;  %v188_v12 = vld [vmem:[%s184_s10 + $0x20] sm:$0x3]  ;;  %v427_v13 = vrot.slane %v1482_v8, 1  ;;  %v436_v14 = vrot.slane %v1484_v9, 1  ;;  %v433_v15 = vrot.slane %v1480_v7, 1  ;;  %v193_v26 = vcombine.low %v1482_v8, %v1480_v7 }
  0x20   : > { %v430_v16 = vrot.slane %v1490_v11, 1  ;;  %v431_v17 = vrot.slane %v188_v12, 1  ;;  %v186_v18 = vld [vmem:[%s184_s10 + $0x8] sm:$0x3]  ;;  %v192_v19 = vld [vmem:[%s184_s10 + $0x50] sm:$0x3]  ;;  %v209_v27 = vcombine.low %v1490_v11, %v1484_v9  ;;  %v194_v56 = vcombine.high %v1482_v8, %v1480_v7 }
  0x21   : > { %v428_v21 = vrot.slane %v186_v18, 1  ;;  %v437_v22 = vrot.slane %v192_v19, 1  ;;  %v190_v23 = vld [vmem:[%s184_s10 + $0x38] sm:$0x3]  ;;  %v665_v24 = vrot.slane %v1490_v11, 2  ;;  %v666_v25 = vrot.slane %v188_v12, 2 }
  0x22   : > { %v434_v28 = vrot.slane %v190_v23, 1  ;;  %v432_v30 = vsel %vm426_vm0, %v430_v16, %v431_v17  ;;  %v662_v32 = vrot.slane %v1482_v8, 2  ;;  %v671_v33 = vrot.slane %v1484_v9, 2  ;;  %s1086_s10 = sshll.u32 %s175_s9, 3  ;;  %s1278_s7 = scalar_lea.vmem %s1277_s6, 256 }
  0x23   : > { %313 = vrot.lane.b32.xlu1 %v1484_v9, %s1370_s11  ;;  %309 = vrot.lane.b32.xlu0 %v1490_v11, %s1370_s11  ;;  %v438_v31 = vsel %vm426_vm0, %v436_v14, %v437_v22  ;;  %v429_v34 = vsel %vm426_vm0, %v427_v13, %v428_v21  ;;  %v663_v37 = vrot.slane %v186_v18, 2  ;;  %v1516_v39 = vsel %vm661_vm1, %v665_v24, %v666_v25 }
  0x24   : > { %v459_v35 = vcombine.low %v432_v30, %v438_v31  ;;  %v435_v36 = vsel %vm426_vm0, %v433_v15, %v434_v28  ;;  %v672_v40 = vrot.slane %v192_v19, 2  ;;  %v668_v41 = vrot.slane %v1480_v7, 2 }
  0x25   : > { %v443_v38 = vcombine.low %v429_v34, %v435_v36  ;;  %v460_v42 = vcombine.high %v432_v30, %v438_v31  ;;  %v669_v44 = vrot.slane %v190_v23, 2  ;;  %v201_v45 = vrot.slane %v193_v26, %v1496_v20 }
  0x26   : > { %v467_v43 = vrot.slane %v459_v35, %v1496_v20  ;;  %v444_v46 = vcombine.high %v429_v34, %v435_v36  ;;  %v673_v48 = vsel %vm661_vm1, %v671_v33, %v672_v40  ;;  %v664_v49 = vsel %vm661_vm1, %v662_v32, %v663_v37 }
  0x27   : > { %548 = vrot.lane.b32.xlu1 %v432_v30, %s1370_s11  ;;  %546 = vrot.lane.b32.xlu0 %v429_v34, %s1370_s11  ;;  %v451_v47 = vrot.slane %v443_v38, %v1496_v20  ;;  %v695_v50 = vcombine.high %v1516_v39, %v673_v48  ;;  %v670_v51 = vsel %vm661_vm1, %v668_v41, %v669_v44 }
  0x28   : > { %v217_v52 = vrot.slane %v209_v27, %v1496_v20  ;;  %v679_v54 = vcombine.high %v664_v49, %v670_v51  ;;  %v474_v57 = vrot.slane %v460_v42, %v1496_v20  ;;  %v458_v58 = vrot.slane %v444_v46, %v1496_v20 }
  0x29   : > { %v475_v53 = vcombine.low %v451_v47, %v467_v43  ;;  %v476_v61 = vcombine.high %v451_v47, %v467_v43  ;;  %v210_v62 = vcombine.high %v1490_v11, %v1484_v9  ;;  %v1544_v0 = vrot.slane %v695_v50, %v1496_v20 }
  0x2a   : > { %v225_v55 = vcombine.low %v201_v45, %v217_v52  ;;  %v492_v63 = vcombine.high %v458_v58, %v474_v57  ;;  %v226_v4 = vcombine.high %v201_v45, %v217_v52  ;;  %v1554_v5 = vrot.slane %v679_v54, %v1496_v20 }
  0x2b   : > { %552 = vrot.lane.b32.xlu1 %v438_v31, %s1370_s11  ;;  %550 = vrot.lane.b32.xlu0 %v435_v36, %s1370_s11  ;;  %v1536_v59 = vrot.slane %v475_v53, %v1503_v29  ;;  %v208_v6 = vrot.slane %v194_v56, %v1496_v20  ;;  %v224_v7 = vrot.slane %v210_v62, %v1496_v20 }
  0x2c   : > { %v1539_v60 = vrot.slane %v225_v55, %v1503_v29  ;;  %v506_v9 = vrot.slane %v492_v63, %v1503_v29  ;;  %v240_v11 = vrot.slane %v226_v4, %v1503_v29  ;;  %v490_v12 = vrot.slane %v476_v61, %v1503_v29 }
  0x2d   : > { %v507_v3 = vcombine.high %v1536_v59, %v1371_v1  ;;  %v242_v8 = vcombine.high %v208_v6, %v224_v7  ;;  %v726_v15 = vcombine.low %v1554_v5, %v1544_v0  ;;  %v694_v16 = vcombine.low %v1516_v39, %v673_v48 }
  0x2e   : > { %v257_v2 = vcombine.high %v1539_v60, %v1371_v1  ;;  %v510_v14 = vcombine.high %v506_v9, %v1371_v1  ;;  %v678_v19 = vcombine.low %v664_v49, %v670_v51  ;;  %v1202_v21 = vpack.i.bf16 %v490_v12, %v240_v11 }
  0x2f   : > { %783 = vrot.lane.b32.xlu1 %v1516_v39, %s1370_s11  ;;  %781 = vrot.lane.b32.xlu0 %v664_v49, %s1370_s11  ;;  %v256_v13 = vrot.slane %v242_v8, %v1503_v29  ;;  %v258_v22 = vcombine.high %v240_v11, %v1371_v1  ;;  %v491_v23 = vcombine.low %v458_v58, %v474_v57 }
  0x30   : > { %v1197_v10 = vpack.i.bf16 %v507_v3, %v257_v2  ;;  %v508_v24 = vcombine.high %v490_v12, %v1371_v1  ;;  %v241_v25 = vcombine.low %v208_v6, %v224_v7  ;;  %v702_v27 = vrot.slane %v694_v16, %v1496_v20 }
  0x31   : > { %v1222_v17 = vpack.i.bf16 %v506_v9, %v256_v13  ;;  %v260_v18 = vcombine.high %v256_v13, %v1371_v1  ;;  %v686_v28 = vrot.slane %v678_v19, %v1496_v20  ;;  %v499_v32 = vrot.slane %v491_v23, %v1503_v29 }
  0x32   : > { %v1207_v30 = vpack.i.bf16 %v508_v24, %v258_v22  ;;  %v249_v31 = vrot.slane %v241_v25, %v1503_v29  ;;  %v727_v37 = vcombine.high %v1554_v5, %v1544_v0  ;;  %v1381_v0 = vmov 0  }
  0x33   : > { %787 = vrot.lane.b32.xlu1 %v673_v48, %s1370_s11  ;;  %785 = vrot.lane.b32.xlu0 %v670_v51, %s1370_s11  ;;  %v1227_v26 = vpack.i.bf16 %v510_v14, %v260_v18  ;;  %v509_v35 = vcombine.high %v499_v32, %v1371_v1  ;;  %v710_v36 = vcombine.low %v686_v28, %v702_v27  ;;  %s1091_s11 = sshll.u32 %s1354_s16, 1  ;;  %s992_s16 = scalar_lea.sflag [#allocation3], %s175_s9 }
  0x34   : > { %v1212_v33 = vpack.i.bf16 %v499_v32, %v249_v31  ;;  %v259_v34 = vcombine.high %v249_v31, %v1371_v1  ;;  %v711_v41 = vcombine.high %v686_v28, %v702_v27  ;;  %1267 = vset.pattern.permute.xlu0 %v1381_v0 }
  0x35   : > { %v1586_v39 = vrot.slane %v710_v36, %v1503_v29 }
  0x36   : > { %v1217_v38 = vpack.i.bf16 %v509_v35, %v259_v34  ;;  %v725_v42 = vrot.slane %v711_v41, %v1503_v29 }
  0x37   : > { %1198 = vrot.lane.b32.xlu0 %v1197_v10, %s1372_s20  ;;  %1223 = vrot.lane.b32.xlu1 %v1222_v17, %s1373_s21  ;;  %v742_v40 = vcombine.high %v1586_v39, %v1371_v1 }
  0x38   : > { %v743_v43 = vcombine.high %v725_v42, %v1371_v1 }
  0x3b   : > { %1203 = vrot.lane.b32.xlu0 %v1202_v21, %s1374_s24  ;;  %1228 = vrot.lane.b32.xlu1 %v1227_v26, %s1375_s27 }
  0x3f   : > { %1208 = vrot.lane.b32.xlu0 %v1207_v30, %s1376_s28 }
  0x43   : > { %1213 = vrot.lane.b32.xlu0 %v1212_v33, %s1377_s29 }
  0x47   : > { %1218 = vrot.lane.b32.xlu0 %v1217_v38, %s1378_s4 }
  0x4b   : > { %747 = vrot.lane.b32.xlu0 %v742_v40, %s1372_s20 }
  0x4f   : > { %751 = vrot.lane.b32.xlu0 %v725_v42, %s1374_s24 }
  0x53   : > { %755 = vrot.lane.b32.xlu0 %v743_v43, %s1376_s28 }
  0x91   : > { %v312_v44 = vpop.permute.xlu1 %311  ;;  %v308_v45 = vpop.permute.xlu0 %307 }
  0x92   : > { %v319_v51 = vcombine.low %v308_v45, %v312_v44  ;;  %v320_v62 = vcombine.high %v308_v45, %v312_v44 }
  0x94   : > { %v327_v63 = vrot.slane %v319_v51, %v1496_v20  ;;  %v334_v12 = vrot.slane %v320_v62, %v1496_v20  ;;  %v734_v51 = vrot.slane %v726_v15, %v1503_v29 }
  0x95   : > { %v314_v46 = vpop.permute.xlu1 %313  ;;  %v310_v47 = vpop.permute.xlu0 %309 }
  0x96   : > { %v335_v48 = vcombine.low %v310_v47, %v314_v46  ;;  %v336_v52 = vcombine.high %v310_v47, %v314_v46 }
  0x98   : > { %v343_v53 = vrot.slane %v335_v48, %v1496_v20  ;;  %v350_v7 = vrot.slane %v336_v52, %v1496_v20 }
  0x99   : > { %v549_v49 = vpop.permute.xlu1 %548  ;;  %v547_v50 = vpop.permute.xlu0 %546 }
  0x9a   : > { %v352_v8 = vcombine.high %v327_v63, %v343_v53  ;;  %v367_v17 = vcombine.low %v334_v12, %v350_v7  ;;  %v351_v22 = vcombine.low %v327_v63, %v343_v53  ;;  %v368_v34 = vcombine.high %v334_v12, %v350_v7 }
  0x9c   : > { %v366_v21 = vrot.slane %v352_v8, %v1503_v29  ;;  %v375_v35 = vrot.slane %v367_v17, %v1503_v29  ;;  %v1615_v36 = vrot.slane %v351_v22, %v1503_v29  ;;  %v382_v46 = vrot.slane %v368_v34, %v1503_v29 }
  0x9d   : > { %v553_v54 = vpop.permute.xlu1 %552  ;;  %v551_v55 = vpop.permute.xlu0 %550 }
  0x9e   : > { %v574_v56 = vcombine.low %v549_v49, %v553_v54  ;;  %v575_v57 = vcombine.high %v549_v49, %v553_v54  ;;  %v558_v58 = vcombine.low %v547_v50, %v551_v55  ;;  %v559_v61 = vcombine.high %v547_v50, %v551_v55 }
  0x9f   : > { %v383_v47 = vcombine.high %v1615_v36, %v1371_v1  ;;  %v384_v15 = vcombine.high %v366_v21, %v1371_v1  ;;  %v385_v63 = vcombine.high %v375_v35, %v1371_v1  ;;  %v386_v7 = vcombine.high %v382_v46, %v1371_v1 }
  0xa0   : > { %v582_v2 = vrot.slane %v574_v56, %v1496_v20  ;;  %v589_v3 = vrot.slane %v575_v57, %v1496_v20  ;;  %v566_v4 = vrot.slane %v558_v58, %v1496_v20  ;;  %v573_v6 = vrot.slane %v559_v61, %v1496_v20 }
  0xa1   : > { %v784_v9 = vpop.permute.xlu1 %783  ;;  %v782_v10 = vpop.permute.xlu0 %781  ;;  %v744_v58 = vcombine.high %v734_v51, %v1371_v1 }
  0xa2   : > { %v591_v11 = vcombine.high %v566_v4, %v582_v2  ;;  %v606_v13 = vcombine.low %v573_v6, %v589_v3  ;;  %v590_v14 = vcombine.low %v566_v4, %v582_v2  ;;  %v607_v23 = vcombine.high %v573_v6, %v589_v3 }
  0xa3   : > { %v1379_v2 = vmov 0.0|0.0   ;;  %v741_v3 = vrot.slane %v727_v37, %v1503_v29 }
  0xa4   : > { %v605_v16 = vrot.slane %v591_v11, %v1503_v29  ;;  %v614_v30 = vrot.slane %v606_v13, %v1503_v29  ;;  %v1608_v31 = vrot.slane %v590_v14, %v1503_v29  ;;  %v621_v43 = vrot.slane %v607_v23, %v1503_v29  ;;  %1108 = vmatprep.subr.bf16.mxu0 %v1379_v2 }
  0xa5   : > { %v788_v18 = vpop.permute.xlu1 %787  ;;  %v786_v19 = vpop.permute.xlu0 %785  ;;  %v745_v37 = vcombine.high %v741_v3, %v1371_v1 }
  0xa6   : > { %v809_v24 = vcombine.low %v784_v9, %v788_v18  ;;  %v793_v25 = vcombine.low %v782_v10, %v786_v19  ;;  %v810_v26 = vcombine.high %v784_v9, %v788_v18  ;;  %v794_v27 = vcombine.high %v782_v10, %v786_v19 }
  0xa7   : > { %v1232_v28 = vpack.i.bf16 %v605_v16, %v366_v21  ;;  %v1237_v42 = vpack.i.bf16 %v614_v30, %v375_v35  ;;  %v622_v45 = vcombine.high %v1608_v31, %v1371_v1  ;;  %v1242_v49 = vpack.i.bf16 %v621_v43, %v382_v46 }
  0xa8   : > { %v817_v32 = vrot.slane %v809_v24, %v1496_v20  ;;  %v801_v33 = vrot.slane %v793_v25, %v1496_v20  ;;  %v824_v40 = vrot.slane %v810_v26, %v1496_v20  ;;  %v808_v41 = vrot.slane %v794_v27, %v1496_v20 }
  0xa9   : > { %1233 = vrot.lane.b32.xlu1 %v1232_v28, %s1374_s24  ;;  %v1247_v50 = vpack.i.bf16 %v622_v45, %v383_v47  ;;  %v623_v56 = vcombine.high %v605_v16, %v1371_v1  ;;  %v624_v62 = vcombine.high %v614_v30, %v1371_v1  ;;  %v625_v6 = vcombine.high %v621_v43, %v1371_v1  ;;  %v1199_v11 = vpop.permute.xlu0 %1198  ;;  %v1677_v18 = vpop.permute.xlu1 %1223 }
  0xaa   : > { %v826_v38 = vcombine.high %v801_v33, %v817_v32  ;;  %v841_v48 = vcombine.low %v808_v41, %v824_v40  ;;  %v825_v20 = vcombine.low %v801_v33, %v817_v32  ;;  %v842_v52 = vcombine.high %v808_v41, %v824_v40 }
  0xab   : > { %v1252_v61 = vpack.i.bf16 %v623_v56, %v384_v15  ;;  %v1257_v4 = vpack.i.bf16 %v624_v62, %v385_v63  ;;  %v1262_v8 = vpack.i.bf16 %v625_v6, %v386_v7  ;;  %v1201_v27 = vunpack.i.h.bf16 %v1199_v11 }
  0xac   : > { %v840_v44 = vrot.slane %v826_v38, %v1503_v29  ;;  %v849_v53 = vrot.slane %v841_v48, %v1503_v29  ;;  %v1636_v54 = vrot.slane %v825_v20, %v1503_v29  ;;  %v856_v55 = vrot.slane %v842_v52, %v1503_v29  ;;  %v910_v29 = vld [vmem:[%s1826_s2] sm:$0xff] }
  0xad   : > { %1238 = vrot.lane.b32.xlu1 %v1237_v42, %s1377_s29  ;;  %v1204_v12 = vpop.permute.xlu0 %1203  ;;  %v1681_v21 = vpop.permute.xlu1 %1228  ;;  %v1200_v28 = vunpack.i.l.bf16 %v1199_v11  ;;  %v539_v35 = vsel %vm289_vm3, %v1536_v59, %v1201_v27 }
  0xae   : > { %866 = vrot.lane.b32.xlu0 %v840_v44, %s1374_s24  ;;  %v857_v57 = vcombine.high %v1636_v54, %v1371_v1  ;;  %v858_v9 = vcombine.high %v840_v44, %v1371_v1  ;;  %v859_v10 = vcombine.high %v849_v53, %v1371_v1  ;;  %v860_v5 = vcombine.high %v856_v55, %v1371_v1  ;;  %s177_s24 = scalar_lea.vmem [#allocation2], %s1086_s10 }
  0xaf   : > { %v1206_v33 = vunpack.i.h.bf16 %v1204_v12  ;;  %v1205_v34 = vunpack.i.l.bf16 %v1204_v12  ;;  %v290_v38 = vsel %vm289_vm3, %v1539_v60, %v1200_v28 }
  0xb1   : > { %1243 = vrot.lane.b32.xlu1 %v1242_v49, %s1373_s21  ;;  %v1209_v13 = vpop.permute.xlu0 %1208  ;;  %v292_v45 = vsel %vm291_vm4, %v290_v38, %v1205_v34  ;;  %v540_v46 = vsel %vm291_vm4, %v539_v35, %v1206_v33 }
  0xb2   : > { %1248 = vrot.lane.b32.xlu0 %v1247_v50, %s1372_s20  ;;  %v1211_v43 = vunpack.i.h.bf16 %v1209_v13  ;;  %v1210_v44 = vunpack.i.l.bf16 %v1209_v13  ;;  %v1231_v13 = vunpack.i.h.bf16 %v1681_v21 }
  0xb4   : > { %v294_v52 = vsel %vm293_vm5, %v292_v45, %v1210_v44 }
  0xb5   : > { %874 = vrot.lane.b32.xlu1 %v849_v53, %s1377_s29  ;;  %v1214_v14 = vpop.permute.xlu0 %1213  ;;  %v541_v53 = vsel %vm293_vm5, %v540_v46, %v1211_v43 }
  0xb6   : > { %759 = vrot.lane.b32.xlu0 %v734_v51, %s1377_s29  ;;  %v1216_v48 = vunpack.i.h.bf16 %v1214_v14  ;;  %v1215_v60 = vunpack.i.l.bf16 %v1214_v14 }
  0xb8   : > { %v296_v62 = vsel %vm295_vm6, %v294_v52, %v1215_v60  ;;  %v542_v63 = vsel %vm295_vm6, %v541_v53, %v1216_v48 }
  0xb9   : > { %882 = vrot.lane.b32.xlu1 %v856_v55, %s1373_s21  ;;  %v1673_v16 = vpop.permute.xlu0 %1218 }
  0xba   : > { %862 = vrot.lane.b32.xlu0 %v857_v57, %s1372_s20  ;;  %v1220_v15 = vunpack.i.l.bf16 %v1673_v16  ;;  %s1003_s20 = sadd.s32 %s1350_s15, %s1091_s11 }
  0xbd   : > { %1253 = vrot.lane.b32.xlu1 %v1252_v61, %s1376_s28  ;;  %v1675_v17 = vpop.permute.xlu0 %747 }
  0xbe   : > { %763 = vrot.lane.b32.xlu0 %v744_v58, %s1378_s4  ;;  %v774_v43 = vsel %vm289_vm3, %v1586_v39, %v1675_v17 }
  0xc1   : > { %1258 = vrot.lane.b32.xlu1 %v1257_v4, %s1378_s4  ;;  %v1679_v19 = vpop.permute.xlu0 %751 }
  0xc2   : > { %767 = vrot.lane.b32.xlu0 %v741_v3, %s1373_s21  ;;  %s1092_s21 = sshll.u32 %s1003_s20, 7 }
  0xc5   : > { %1263 = vrot.lane.b32.xlu1 %v1262_v8, %s1375_s27  ;;  %v1683_v23 = vpop.permute.xlu0 %755  ;;  %v1226_v8 = vunpack.i.h.bf16 %v1677_v18 }
  0xc6   : > { %913 = vperm.xlu0 %1267, %v910_v29  }
  0xc9   : > { %870 = vrot.lane.b32.xlu1 %v858_v9, %s1376_s28  ;;  %v1225_v9 = vunpack.i.l.bf16 %v1677_v18 }
  0xcd   : > { %878 = vrot.lane.b32.xlu1 %v859_v10, %s1378_s4  ;;  %s1771_s4 = scalar_lea.hbm %s1827_s3, %s1092_s21 }
  0xd1   : > { %886 = vrot.lane.b32.xlu1 %v860_v5, %s1375_s27  ;;  %v298_v5 = vsel %vm297_vm7, %v296_v62, %v1220_v15 }
  0xd2   : > { %v300_v34 = vsel %vm299_vm8, %v298_v5, %v1225_v9 }
  0xd5   : > { %771 = vrot.lane.b32.xlu1 %v745_v37, %s1375_s27  ;;  %s1007_s27 = sshll.u32 %s177_s24, 4  ;;  %s1773_s27 = int_to_ptr.vmem [resolvable:$true] %s1007_s27 }
  0xd6   : > { %s1272_s15 = scalar_lea.vmem %s1773_s27, 128  ;;  %p1279_p2 = scmp.lt.s32.totalorder %s1773_s27, %s1277_s6 }
  0xd7   : > { %p1273_p13 = scmp.ne.s32.totalorder %s1773_s27, %s1272_s15  ;;  %p1280_p4 = scmp.lt.s32.totalorder %s1278_s7, %s1272_s15 }
  0xd9   : > { %p1274_p0 = pnand %p1273_p13, %p1454_p3  ;;  %p1281_p5 = por %p1280_p4, %p1279_p2 }
  0xdb   : > { %p1275_p1 = pneg %p1274_p0 }
  0xdd   : > { %p1282_p6 = pnand %p1281_p5, %p1275_p1 }
 0x11b   : > { %v1234_v22 = vpop.permute.xlu1 %1233 }
 0x11c   : > { %v1236_v49 = vunpack.i.h.bf16 %v1234_v22  ;;  %v1235_v20 = vunpack.i.l.bf16 %v1234_v22  ;;  %v1230_v22 = vunpack.i.l.bf16 %v1681_v21 }
 0x11e   : > { %v302_v45 = vsel %vm301_vm9, %v300_v34, %v1230_v22 }
 0x11f   : > { %v1239_v24 = vpop.permute.xlu1 %1238 }
 0x120   : > { %v1685_v25 = vpop.permute.xlu0 %866  ;;  %v1241_v2 = vunpack.i.h.bf16 %v1239_v24  ;;  %v1240_v3 = vunpack.i.l.bf16 %v1239_v24 }
 0x123   : > { %v1687_v26 = vpop.permute.xlu1 %1243 }
 0x124   : > { %v1249_v30 = vpop.permute.xlu0 %1248  ;;  %v1246_v14 = vunpack.i.h.bf16 %v1687_v26 }
 0x125   : > { %v1251_v40 = vunpack.i.h.bf16 %v1249_v30  ;;  %v1250_v41 = vunpack.i.l.bf16 %v1249_v30 }
 0x127   : > { %v1689_v32 = vpop.permute.xlu1 %874  ;;  %v654_v47 = vsel %vm289_vm3, %v1608_v31, %v1251_v40  ;;  %v415_v59 = vsel %vm289_vm3, %v1615_v36, %v1250_v41  ;;  %v1221_v36 = vunpack.i.h.bf16 %v1673_v16  ;;  %v1245_v16 = vunpack.i.l.bf16 %v1687_v26 }
 0x128   : > { %v1703_v50 = vpop.permute.xlu0 %759  ;;  %v416_v57 = vsel %vm291_vm4, %v415_v59, %v1235_v20  ;;  %v655_v31 = vsel %vm291_vm4, %v654_v47, %v1236_v49  ;;  %v775_v49 = vsel %vm291_vm4, %v774_v43, %v1679_v19 }
 0x129   : > { %v543_v37 = vsel %vm297_vm7, %v542_v63, %v1221_v36  ;;  %v776_v17 = vsel %vm293_vm5, %v775_v49, %v1683_v23 }
 0x12a   : > { %v544_v35 = vsel %vm299_vm8, %v543_v37, %v1226_v8 }
 0x12b   : > { %v1695_v42 = vpop.permute.xlu1 %882  ;;  %v545_v46 = vsel %vm301_vm9, %v544_v35, %v1231_v13 }
 0x12c   : > { %v863_v10 = vpop.permute.xlu0 %862 }
 0x12d   : > { %v889_v24 = vsel %vm289_vm3, %v1636_v54, %v863_v10 }
 0x12e   : > { %v890_v54 = vsel %vm291_vm4, %v889_v24, %v1685_v25 }
 0x12f   : > { %v1254_v51 = vpop.permute.xlu1 %1253 }
 0x130   : > { %v1256_v55 = vunpack.i.h.bf16 %v1254_v51  ;;  %v1255_v56 = vunpack.i.l.bf16 %v1254_v51  ;;  %v764_v48 = vpop.permute.xlu0 %763 }
 0x132   : > { %v417_v58 = vsel %vm293_vm5, %v416_v57, %v1255_v56  ;;  %v656_v61 = vsel %vm293_vm5, %v655_v31, %v1256_v55 }
 0x133   : > { %v1259_v4 = vpop.permute.xlu1 %1258  ;;  %v418_v29 = vsel %vm295_vm6, %v417_v58, %v1240_v3  ;;  %v657_v0 = vsel %vm295_vm6, %v656_v61, %v1241_v2 }
 0x134   : > { %v1261_v6 = vunpack.i.h.bf16 %v1259_v4  ;;  %v1260_v7 = vunpack.i.l.bf16 %v1259_v4  ;;  %v768_v53 = vpop.permute.xlu0 %767 }
 0x136   : > { %v419_v11 = vsel %vm297_vm7, %v418_v29, %v1260_v7  ;;  %v658_v12 = vsel %vm297_vm7, %v657_v0, %v1261_v6 }
 0x137   : > { %v1264_v18 = vpop.permute.xlu1 %1263  ;;  %v420_v30 = vsel %vm299_vm8, %v419_v11, %v1245_v16  ;;  %v659_v33 = vsel %vm299_vm8, %v658_v12, %v1246_v14 }
 0x138   : > { %v1266_v27 = vunpack.i.h.bf16 %v1264_v18  ;;  %v1265_v28 = vunpack.i.l.bf16 %v1264_v18 }
 0x13a   : > { %v421_v38 = vsel %vm301_vm9, %v420_v30, %v1265_v28  ;;  %v660_v26 = vsel %vm301_vm9, %v659_v33, %v1266_v27 }
 0x13b   : > { %v897_v40 = vrot.slane %v421_v38, 4  ;;  %v900_v21 = vrot.slane %v660_v26, 4  ;;  %v871_v41 = vpop.permute.xlu1 %870 }
 0x13c   : > { %v891_v44 = vsel %vm293_vm5, %v890_v54, %v871_v41 }
 0x13d   : > { %v906_v47 = vsel %vm905_vm10, %v302_v45, %v897_v40  ;;  %v907_v59 = vsel %vm905_vm10, %v545_v46, %v900_v21  ;;  %v892_v20 = vsel %vm295_vm6, %v891_v44, %v1689_v32  ;;  %v777_v32 = vsel %vm295_vm6, %v776_v17, %v1703_v50 }
 0x13e   : > { %v1109_v60 = vpack.c.bf16 %v907_v59, %v906_v47  ;;  %v778_v55 = vsel %vm297_vm7, %v777_v32, %v764_v48 }
 0x13f   : > { %v879_v25 = vpop.permute.xlu1 %878 }
 0x140   : > { %v893_v39 = vsel %vm297_vm7, %v892_v20, %v879_v25  ;;  %1110 = vmatpush3.bf16.msra.mxu0 %v1109_v60 }
 0x141   : > { %1103 = vmatprep.subr.mxu0 %v1371_v1  ;;  %v894_v52 = vsel %vm299_vm8, %v893_v39, %v1695_v42  ;;  %v779_v1 = vsel %vm299_vm8, %v778_v55, %v768_v53  ;;  %v909_v42 = vld [vmem:[%s1825_s1] sm:$0xff] }
 0x143   : > { %v887_v51 = vpop.permute.xlu1 %886 }
 0x144   : > { %v895_v19 = vsel %vm301_vm9, %v894_v52, %v887_v51 }
 0x145   : > { %v903_v56 = vrot.slane %v895_v19, 4  ;;  %v914_v50 = vpop.permute.xlu0 %913 }
 0x147   : > { %v772_v57 = vpop.permute.xlu1 %771 }
 0x148   : > { %v780_v23 = vsel %vm301_vm9, %v779_v1, %v772_v57 }
 0x149   : > { %v908_v31 = vsel %vm905_vm10, %v780_v23, %v903_v56 }
 0x14a   : > { %1104 = vmatpush3.msra.mxu0 %v908_v31 }
 0x14b   : > { %1106 = vmatmul.mubr.msk.f32.vlgmr.msra.gmra.mrb[0].mxu0 %vm916_vm11, %v909_v42 }
 0x21e   : > { %v986_v36 = vpop.f32.mrb[0].mxu0 }
 0x21f   : > { %v987_v15 = vadd.f32 %v986_v36, %v914_v50  ;;  %v1107_v58 = vpop.f32.mrb[1].mxu0 }
 0x221   : > { %990 = vst [vmem:[%s177_s24] sm:$0xff] %v987_v15 }
 0x222   : > { %1285 = shalt.err (!%p1282_p6)
}
 0x223   : > { %s1286_s8 = scalar_lea.hbm %s1771_s4, 128  ;;  %s1290_s11 = scalar_lea.hbm %s1827_s3, 512 }
 0x224   : > { %p1287_p7 = scmp.ne.s32.totalorder %s1771_s4, %s1286_s8  ;;  %p1291_p11 = scmp.lt.u32.totalorder %s1771_s4, %s1827_s3 }
 0x225   : > { %p1292_p12 = scmp.lt.u32.totalorder %s1290_s11, %s1286_s8  ;;  %p1294_p0 = scmp.lt.u32.totalorder %s1286_s8, %s1771_s4 }
 0x226   : > { %p1288_p9 = pnand %p1287_p7, %p1454_p3 }
 0x227   : > { %p1293_p13 = por %p1292_p12, %p1291_p11 }
 0x228   : > { %p1289_p10 = pneg %p1288_p9 }
 0x229   : > { %p1295_p1 = por %p1294_p0, %p1293_p13 }
 0x22b   : > { %p1296_p2 = pnand %p1295_p1, %p1289_p10 }
 0x22d   : > { %1299 = shalt.err (!%p1296_p2)
}
 0x22e   : > { %1112 = dma.vmem_to_hbm [thread:$0]  (%p1454_p3), %s1773_s27, 128, %s1771_s4, %s992_s16  }
 0x22f PF: > { %p1118_p4 = scmp.ge.s32.totalorder %s1366_s19, 2  ;;  %s1019_s24 = sand.u32 1, %s1338_s12  }
 0x230   : > { %s1020_s28 = scalar_lea.sflag [#allocation3], %s1019_s24 }
 0x231   : > { %p1115_p5 = pnand %p1118_p4, %p1463_p8 }
 0x233   : > { %1333 = dma.done.wait (!%p1115_p5), %s1020_s28, 128  }
 0x234   : > { %1335 = vsyncadd (!%p1115_p5), %s1020_s28, 4294967168  ;;  %s16_s19 = sadd.s32 1, %s1366_s19   ;;  %s1830_s12 = smov %s1342_s13 }
 0x235   : > { %p13_p6 = scmp.ge.s32.totalorder %s16_s19, 6   ;;  %s1831_s13 = smov %s1346_s14 }
 0x236   : > { %s1832_s14 = smov %s1472_s30  ;;  %s1833_s15 = smov %s1358_s17 }
 0x237   : > { %s1834_s16 = smov %s1362_s18  ;;  %s1835_s17 = smov %s1838_s22 }
 0x238   : > { %s1836_s18 = smov %s1842_s23  ;;  %15 = sbr.rel (!%p13_p6) target bundleno = 5 (0x5), region = 68 }
 0x23f   :  { %1025 = vsyncpa [#allocation3], 1 }
 0x240   :  { %1027 = vsyncpa [#allocation3 + $0x1], 1 }

</bundles_post_ra>
